<compile_context>
chip_gen: v6e
topology: v6e:2x2x1
jax: 0.10.0
libtpu: 0.0.40
codegen_flags: <defaults>
</compile_context>

<pallas_src>
import functools
import inspect
import math

import jax
import jax.numpy as jnp
from jax import lax
from jax.experimental import pallas as pl
from jax.experimental.pallas import tpu as pltpu


def _blockspec_supports_pipeline_mode():
    try:
        return ("pipeline_mode" in inspect.signature(pl.BlockSpec).parameters
                and hasattr(pl, "Buffered"))
    except (TypeError, ValueError):
        return False


_HAS_PIPELINE_MODE = _blockspec_supports_pipeline_mode()


def _cross_attn_kernel(batch_block, n_heads, seq_s, seq_q, dqk, dv, Dqk,
                       compute_dtype,
                       xs_ref, xq_ref, wq_ref, bq_ref, wkv_ref, bkv_ref,
                       wp_ref, bp_ref, out_ref, ctx_ref):
    """Fused cross-attention for `batch_block` batch elements.

    xs_ref: (Bb*L1, C1) rows, xq_ref: (Bb*L2, C2) rows.
    wq_ref: (C2, Dqk) with the 1/qk_head scale pre-folded, wkv_ref:
    (C1, Dqk+Dv), wp_ref: (Dv, P_pad).  ctx_ref: (Bb*L2, Dv) f32 scratch.
    """
    xs = xs_ref[...].astype(compute_dtype)      # (Bb*L1, C1)
    xq = xq_ref[...].astype(compute_dtype)      # (Bb*L2, C2)

    # Two full-width projection dots (lane-dense), f32 accumulation; bias add
    # in f32, then a single cast to the MXU operand dtype for the attn dots.
    q_all = (jnp.dot(xq, wq_ref[...], preferred_element_type=jnp.float32)
             + bq_ref[...]).astype(compute_dtype)            # (Bb*L2, Dqk)
    kv_all = (jnp.dot(xs, wkv_ref[...], preferred_element_type=jnp.float32)
              + bkv_ref[...]).astype(compute_dtype)          # (Bb*L1, Dqk+Dv)

    # q @ k^T without an explicit transpose: contract last dims of both.
    dn = (((1,), (1,)), ((), ()))

    for b in range(batch_block):                 # static, unrolled
        for h in range(n_heads):
            q_bh = q_all[b * seq_q:(b + 1) * seq_q, h * dqk:(h + 1) * dqk]
            k_bh = kv_all[b * seq_s:(b + 1) * seq_s, h * dqk:(h + 1) * dqk]
            v_bh = kv_all[b * seq_s:(b + 1) * seq_s,
                          Dqk + h * dv:Dqk + (h + 1) * dv]

            scores = lax.dot_general(q_bh, k_bh, dn,
                                     preferred_element_type=jnp.float32)
            scores = scores - jnp.max(scores, axis=-1, keepdims=True)
            e = jnp.exp(scores)                              # f32 softmax
            probs = e * pl.reciprocal(jnp.sum(e, axis=-1, keepdims=True),
                                      approx=True)

            ctx = jnp.dot(probs.astype(compute_dtype), v_bh,
                          preferred_element_type=jnp.float32)  # (L2, dv) f32
            # Stage the per-head context at lane offset h*dv so the output
            # projection below is one full-width dot (head reduction on MXU).
            ctx_ref[pl.ds(b * seq_q, seq_q), pl.ds(h * dv, dv)] = ctx

    out = (jnp.dot(ctx_ref[...].astype(compute_dtype), wp_ref[...],
                   preferred_element_type=jnp.float32) + bp_ref[...])
    out_ref[...] = out.astype(out_ref.dtype)     # one lane-dense store


def prepare_params(params, n_heads, *, proj_pad_to=128,
                   compute_dtype=jnp.bfloat16):
    """One-time parameter prep (hoist out of the forward path)."""
    wq, bq, wk, bk, wv, bv, wp, bp = params
    Dqk = wq.shape[1]
    qk_head = Dqk // n_heads
    # Module default q_scale (qk_head**-0.5) times the reference's extra
    # /sqrt(head_features) (== qk_head_features) -> 1/qk_head total, folded
    # into the Q projection weights and bias (scale-after-bias semantics).
    total_scale = (qk_head ** -0.5) / math.sqrt(qk_head)
    wq_p = (wq * total_scale).astype(compute_dtype)
    bq_p = (bq.reshape(1, -1) * total_scale).astype(jnp.float32)
    wkv_p = jnp.concatenate([wk, wv], axis=1).astype(compute_dtype)
    bkv_p = jnp.concatenate([bk.reshape(1, -1), bv.reshape(1, -1)],
                            axis=1).astype(jnp.float32)
    P = wp.shape[1]
    P_pad = ((P + proj_pad_to - 1) // proj_pad_to) * proj_pad_to
    wp_p = jnp.pad(wp, ((0, 0), (0, P_pad - P))).astype(compute_dtype)
    bp_p = jnp.pad(bp.reshape(1, -1),
                   ((0, 0), (0, P_pad - P))).astype(jnp.float32)
    return (wq_p, bq_p, wkv_p, bkv_p, wp_p, bp_p), P, P_pad


def uni_directional_cross_attention(xs, xq, prepped, n_heads, *,
                                    batch_block=None,
                                    compute_dtype=jnp.bfloat16):
    """xs: [B, L1, C1], xq: [B, L2, C2] -> [B, L2, proj_n_features]."""
    (wq_p, bq_p, wkv_p, bkv_p, wp_p, bp_p), P, P_pad = prepped
    B, L1, C1 = xs.shape
    Bq, L2, C2 = xq.shape
    assert B == Bq
    Dqk = wq_p.shape[1]
    Dkv = wkv_p.shape[1]
    Dv = Dkv - Dqk
    dqk = Dqk // n_heads
    dv = Dv // n_heads

    if batch_block is None:
        # >= 2 grid steps when B allows: shards across v7x's 2 TensorCores and
        # lets BlockSpec double-buffering hide the xs/xq DMA behind compute.
        batch_block = B // 2 if (B >= 2 and B % 2 == 0) else 1
    assert B % batch_block == 0
    n_blocks = B // batch_block

    # Fold (B, L) -> rows (free, contiguous reshape in HBM).
    xs2 = xs.reshape(B * L1, C1)
    xq2 = xq.reshape(B * L2, C2)

    kernel = functools.partial(_cross_attn_kernel, batch_block, n_heads,
                               L1, L2, dqk, dv, Dqk, compute_dtype)

    def const_spec(shape):
        nd = len(shape)
        kwargs = {}
        if _HAS_PIPELINE_MODE:
            # Block index never changes -> single buffer saves weight VMEM.
            kwargs["pipeline_mode"] = pl.Buffered(1)
        return pl.BlockSpec(shape, lambda i, _n=nd: (0,) * _n, **kwargs)

    # Explicit scoped-VMEM budget from the actual block sizes (+ headroom).
    itemsize = lambda a: a.dtype.itemsize
    blk_xs_bytes = batch_block * L1 * C1 * xs.dtype.itemsize
    blk_xq_bytes = batch_block * L2 * C2 * xq.dtype.itemsize
    w_bytes = sum(a.size * itemsize(a)
                  for a in (wq_p, bq_p, wkv_p, bkv_p, wp_p, bp_p))
    w_buf = 1 if _HAS_PIPELINE_MODE else 2
    out_bytes = batch_block * L2 * P_pad * jnp.dtype(xq.dtype).itemsize
    scratch_bytes = batch_block * L2 * Dv * 4
    vmem_limit = int(1.5 * (2 * (blk_xs_bytes + blk_xq_bytes)
                            + w_buf * w_bytes + 2 * out_bytes
                            + scratch_bytes))
    vmem_limit = min(max(vmem_limit, 16 << 20), 64 << 20)

    out2 = pl.pallas_call(
        kernel,
        out_shape=jax.ShapeDtypeStruct((B * L2, P_pad), xq.dtype),
        grid_spec=pltpu.PrefetchScalarGridSpec(
            num_scalar_prefetch=0,
            grid=(n_blocks,),
            in_specs=[
                pl.BlockSpec((batch_block * L1, C1), lambda i: (i, 0)),  # xs
                pl.BlockSpec((batch_block * L2, C2), lambda i: (i, 0)),  # xq
                const_spec((C2, Dqk)),        # Wq  (scale folded)
                const_spec((1, Dqk)),         # bq  (scale folded)
                const_spec((C1, Dkv)),        # [Wk | Wv]
                const_spec((1, Dkv)),         # [bk | bv]
                const_spec((Dv, P_pad)),      # Wp  (lane-padded)
                const_spec((1, P_pad)),       # bp  (lane-padded)
            ],
            out_specs=pl.BlockSpec((batch_block * L2, P_pad),
                                   lambda i: (i, 0)),
            scratch_shapes=[pltpu.VMEM((batch_block * L2, Dv), jnp.float32)],
        ),
        compiler_params=pltpu.CompilerParams(
            dimension_semantics=("parallel",),
            vmem_limit_bytes=vmem_limit),
    )(xs2, xq2, wq_p, bq_p, wkv_p, bkv_p, wp_p, bp_p)

    return out2[:, :P].reshape(B, L2, P)


def _reference(xs, xq, params, n_heads):
    """Pure-JAX (f32) mirror of the PyTorch forward for validation."""
    wq, bq, wk, bk, wv, bv, wp, bp = params
    B, L1, C1 = xs.shape
    _, L2, C2 = xq.shape
    Dqk, Dv = wq.shape[1], wv.shape[1]
    dqk, dv = Dqk // n_heads, Dv // n_heads
    q = (xq @ wq + bq).reshape(B, L2, n_heads, dqk).transpose(0, 2, 1, 3)
    k = (xs @ wk + bk).reshape(B, L1, n_heads, dqk).transpose(0, 2, 1, 3)
    v = (xs @ wv + bv).reshape(B, L1, n_heads, dv).transpose(0, 2, 1, 3)
    q = q * (dqk ** -0.5)
    scores = jnp.einsum("bhqd,bhkd->bhqk", q, k) / math.sqrt(dqk)
    probs = jax.nn.softmax(scores, axis=-1)
    ctx = jnp.einsum("bhqk,bhkd->bhqd", probs, v).transpose(0, 2, 1, 3)
    ctx = ctx.reshape(B, L2, Dv)
    return ctx @ wp + bp


def _init_params(key, xs_n_features, xq_n_features, mapped_qk, mapped_v, proj_n):
    ks = jax.random.split(key, 8)
    s = 0.05
    wq = jax.random.normal(ks[0], (xq_n_features, mapped_qk), jnp.float32) * s
    bq = jax.random.normal(ks[1], (1, mapped_qk), jnp.float32) * s
    wk = jax.random.normal(ks[2], (xs_n_features, mapped_qk), jnp.float32) * s
    bk = jax.random.normal(ks[3], (1, mapped_qk), jnp.float32) * s
    wv = jax.random.normal(ks[4], (xs_n_features, mapped_v), jnp.float32) * s
    bv = jax.random.normal(ks[5], (1, mapped_v), jnp.float32) * s
    wp = jax.random.normal(ks[6], (mapped_v, proj_n), jnp.float32) * s
    bp = jax.random.normal(ks[7], (1, proj_n), jnp.float32) * s
    return (wq, bq, wk, bk, wv, bv, wp, bp)


if __name__ == "__main__":
    # Small module config (all optional feature counts given explicitly).
    B, L1, L2 = 2, 16, 8
    xs_n_features, xq_n_features = 24, 32
    n_heads = 4
    mapped_qk, mapped_v, proj_n = 32, 32, 32

    key = jax.random.PRNGKey(0)
    kxs, kxq, kp = jax.random.split(key, 3)
    xs = jax.random.normal(kxs, (B, L1, xs_n_features), jnp.float32)
    xq = jax.random.normal(kxq, (B, L2, xq_n_features), jnp.float32)
    params = _init_params(kp, xs_n_features, xq_n_features,
                          mapped_qk, mapped_v, proj_n)

    # One-time parameter prep (scale fold, K/V fusion, P padding, bf16 cast).
    prepped = prepare_params(params, n_heads)

    out = uni_directional_cross_attention(xs, xq, prepped, n_heads)
    out = jax.block_until_ready(out)

    ref = _reference(xs, xq, params, n_heads)
    assert out.shape == (B, L2, proj_n)
    # bf16 MXU operands + approx reciprocal -> loose tolerance vs f32 reference.
    assert jnp.allclose(out, ref, atol=2e-2, rtol=2e-2), "mismatch vs reference"
    print("KERNEL_OK")
</pallas_src>

<mosaic_0001>
module attributes {stable_mosaic.version = 11 : i64} {
  func.func @_cross_attn_kernel(%arg0: i32, %arg1: memref<16x24xf32, #tpu.memory_space<vmem>>, %arg2: memref<8x32xf32, #tpu.memory_space<vmem>>, %arg3: memref<32x32xbf16, #tpu.memory_space<vmem>>, %arg4: memref<1x32xf32, #tpu.memory_space<vmem>>, %arg5: memref<24x64xbf16, #tpu.memory_space<vmem>>, %arg6: memref<1x64xf32, #tpu.memory_space<vmem>>, %arg7: memref<32x128xbf16, #tpu.memory_space<vmem>>, %arg8: memref<1x128xf32, #tpu.memory_space<vmem>>, %arg9: memref<8x128xf32, #tpu.memory_space<vmem>>, %arg10: memref<8x32xf32, #tpu.memory_space<vmem>>) attributes {dimension_semantics = [#tpu.dimension_semantics<parallel>], iteration_bounds = array<i64: 2>, scalar_prefetch = 0 : i64, scratch_operands = 1 : i64, tpu.core_type = #tpu.core_type<tc>, window_params = [{transform_indices = @transform_0, window_bounds = array<i64: 16, 24>}, {transform_indices = @transform_1, window_bounds = array<i64: 8, 32>}, {pipeline_mode = #tpu.pipeline_mode<synchronous>, transform_indices = @transform_2, window_bounds = array<i64: 32, 32>}, {pipeline_mode = #tpu.pipeline_mode<synchronous>, transform_indices = @transform_3, window_bounds = array<i64: 1, 32>}, {pipeline_mode = #tpu.pipeline_mode<synchronous>, transform_indices = @transform_4, window_bounds = array<i64: 24, 64>}, {pipeline_mode = #tpu.pipeline_mode<synchronous>, transform_indices = @transform_5, window_bounds = array<i64: 1, 64>}, {pipeline_mode = #tpu.pipeline_mode<synchronous>, transform_indices = @transform_6, window_bounds = array<i64: 32, 128>}, {pipeline_mode = #tpu.pipeline_mode<synchronous>, transform_indices = @transform_7, window_bounds = array<i64: 1, 128>}, {transform_indices = @transform_8, window_bounds = array<i64: 8, 128>}]} {
    %c0 = arith.constant 0 : index
    %c0_0 = arith.constant 0 : index
    %0 = vector.load %arg1[%c0, %c0_0] : memref<16x24xf32, #tpu.memory_space<vmem>>, vector<16x24xf32>
    %1 = arith.truncf %0 : vector<16x24xf32> to vector<16x24xbf16>
    %c0_1 = arith.constant 0 : index
    %c0_2 = arith.constant 0 : index
    %2 = vector.load %arg2[%c0_1, %c0_2] : memref<8x32xf32, #tpu.memory_space<vmem>>, vector<8x32xf32>
    %3 = arith.truncf %2 : vector<8x32xf32> to vector<8x32xbf16>
    %c0_3 = arith.constant 0 : index
    %c0_4 = arith.constant 0 : index
    %4 = vector.load %arg3[%c0_3, %c0_4] : memref<32x32xbf16, #tpu.memory_space<vmem>>, vector<32x32xbf16>
    %cst = arith.constant dense<0.000000e+00> : vector<8x32xf32>
    %5 = tpu.matmul %3, %4, %cst {dimension_numbers = #tpu.dot_dimension_numbers<[1], [0], [0], [1], [0, 0, 1, 1], [], []>} : vector<8x32xbf16>, vector<32x32xbf16>, vector<8x32xf32> -> vector<8x32xf32>
    %c0_5 = arith.constant 0 : index
    %c0_6 = arith.constant 0 : index
    %6 = vector.load %arg4[%c0_5, %c0_6] : memref<1x32xf32, #tpu.memory_space<vmem>>, vector<1x32xf32>
    %7 = vector.broadcast %6 : vector<1x32xf32> to vector<8x32xf32>
    %8 = arith.addf %5, %7 : vector<8x32xf32>
    %9 = arith.truncf %8 : vector<8x32xf32> to vector<8x32xbf16>
    %c0_7 = arith.constant 0 : index
    %c0_8 = arith.constant 0 : index
    %10 = vector.load %arg5[%c0_7, %c0_8] : memref<24x64xbf16, #tpu.memory_space<vmem>>, vector<24x64xbf16>
    %cst_9 = arith.constant dense<0.000000e+00> : vector<16x64xf32>
    %11 = tpu.matmul %1, %10, %cst_9 {dimension_numbers = #tpu.dot_dimension_numbers<[1], [0], [0], [1], [0, 0, 1, 1], [], []>} : vector<16x24xbf16>, vector<24x64xbf16>, vector<16x64xf32> -> vector<16x64xf32>
    %c0_10 = arith.constant 0 : index
    %c0_11 = arith.constant 0 : index
    %12 = vector.load %arg6[%c0_10, %c0_11] : memref<1x64xf32, #tpu.memory_space<vmem>>, vector<1x64xf32>
    %13 = vector.broadcast %12 : vector<1x64xf32> to vector<16x64xf32>
    %14 = arith.addf %11, %13 : vector<16x64xf32>
    %15 = arith.truncf %14 : vector<16x64xf32> to vector<16x64xbf16>
    %16 = vector.extract_strided_slice %9 {offsets = [0, 0], sizes = [8, 8], strides = [1, 1]} : vector<8x32xbf16> to vector<8x8xbf16>
    %17 = vector.extract_strided_slice %15 {offsets = [0, 0], sizes = [16, 8], strides = [1, 1]} : vector<16x64xbf16> to vector<16x8xbf16>
    %18 = vector.extract_strided_slice %15 {offsets = [0, 32], sizes = [16, 8], strides = [1, 1]} : vector<16x64xbf16> to vector<16x8xbf16>
    %cst_12 = arith.constant dense<0.000000e+00> : vector<8x16xf32>
    %19 = tpu.matmul %16, %17, %cst_12 {dimension_numbers = #tpu.dot_dimension_numbers<[1], [1], [0], [0], [0, 0, 1, 0], [], []>} : vector<8x8xbf16>, vector<16x8xbf16>, vector<8x16xf32> -> vector<8x16xf32>
    %cst_13 = arith.constant dense<0xFF800000> : vector<8xf32>
    %20 = vector.multi_reduction <maximumf>, %19, %cst_13 [1] : vector<8x16xf32> to vector<8xf32>
    %21 = vector.shape_cast %20 : vector<8xf32> to vector<8x1xf32>
    %22 = vector.broadcast %21 : vector<8x1xf32> to vector<8x16xf32>
    %23 = arith.subf %19, %22 : vector<8x16xf32>
    %24 = math.exp %23 : vector<8x16xf32>
    %cst_14 = arith.constant dense<0.000000e+00> : vector<8xf32>
    %25 = vector.multi_reduction <add>, %24, %cst_14 [1] : vector<8x16xf32> to vector<8xf32>
    %26 = vector.shape_cast %25 : vector<8xf32> to vector<8x1xf32>
    %27 = tpu.reciprocal %26 {approx = true} : vector<8x1xf32> -> vector<8x1xf32>
    %28 = vector.broadcast %27 : vector<8x1xf32> to vector<8x16xf32>
    %29 = arith.mulf %24, %28 : vector<8x16xf32>
    %30 = arith.truncf %29 : vector<8x16xf32> to vector<8x16xbf16>
    %cst_15 = arith.constant dense<0.000000e+00> : vector<8x8xf32>
    %31 = tpu.matmul %30, %18, %cst_15 {dimension_numbers = #tpu.dot_dimension_numbers<[1], [0], [0], [1], [0, 0, 1, 1], [], []>} : vector<8x16xbf16>, vector<16x8xbf16>, vector<8x8xf32> -> vector<8x8xf32>
    %c0_16 = arith.constant 0 : index
    %c0_17 = arith.constant 0 : index
    %32 = vector.load %arg10[%c0_16, %c0_17] : memref<8x32xf32, #tpu.memory_space<vmem>>, vector<8x8xf32>
    tpu.vector_store %arg10[%c0_16, %c0_17], %31 {strides = array<i32>} : memref<8x32xf32, #tpu.memory_space<vmem>>, vector<8x8xf32>,
    %33 = vector.extract_strided_slice %9 {offsets = [0, 8], sizes = [8, 8], strides = [1, 1]} : vector<8x32xbf16> to vector<8x8xbf16>
    %34 = vector.extract_strided_slice %15 {offsets = [0, 8], sizes = [16, 8], strides = [1, 1]} : vector<16x64xbf16> to vector<16x8xbf16>
    %35 = vector.extract_strided_slice %15 {offsets = [0, 40], sizes = [16, 8], strides = [1, 1]} : vector<16x64xbf16> to vector<16x8xbf16>
    %cst_18 = arith.constant dense<0.000000e+00> : vector<8x16xf32>
    %36 = tpu.matmul %33, %34, %cst_18 {dimension_numbers = #tpu.dot_dimension_numbers<[1], [1], [0], [0], [0, 0, 1, 0], [], []>} : vector<8x8xbf16>, vector<16x8xbf16>, vector<8x16xf32> -> vector<8x16xf32>
    %cst_19 = arith.constant dense<0xFF800000> : vector<8xf32>
    %37 = vector.multi_reduction <maximumf>, %36, %cst_19 [1] : vector<8x16xf32> to vector<8xf32>
    %38 = vector.shape_cast %37 : vector<8xf32> to vector<8x1xf32>
    %39 = vector.broadcast %38 : vector<8x1xf32> to vector<8x16xf32>
    %40 = arith.subf %36, %39 : vector<8x16xf32>
    %41 = math.exp %40 : vector<8x16xf32>
    %cst_20 = arith.constant dense<0.000000e+00> : vector<8xf32>
    %42 = vector.multi_reduction <add>, %41, %cst_20 [1] : vector<8x16xf32> to vector<8xf32>
    %43 = vector.shape_cast %42 : vector<8xf32> to vector<8x1xf32>
    %44 = tpu.reciprocal %43 {approx = true} : vector<8x1xf32> -> vector<8x1xf32>
    %45 = vector.broadcast %44 : vector<8x1xf32> to vector<8x16xf32>
    %46 = arith.mulf %41, %45 : vector<8x16xf32>
    %47 = arith.truncf %46 : vector<8x16xf32> to vector<8x16xbf16>
    %cst_21 = arith.constant dense<0.000000e+00> : vector<8x8xf32>
    %48 = tpu.matmul %47, %35, %cst_21 {dimension_numbers = #tpu.dot_dimension_numbers<[1], [0], [0], [1], [0, 0, 1, 1], [], []>} : vector<8x16xbf16>, vector<16x8xbf16>, vector<8x8xf32> -> vector<8x8xf32>
    %c0_22 = arith.constant 0 : index
    %c8 = arith.constant 8 : index
    %49 = vector.load %arg10[%c0_22, %c8] : memref<8x32xf32, #tpu.memory_space<vmem>>, vector<8x8xf32>
    tpu.vector_store %arg10[%c0_22, %c8], %48 {strides = array<i32>} : memref<8x32xf32, #tpu.memory_space<vmem>>, vector<8x8xf32>,
    %50 = vector.extract_strided_slice %9 {offsets = [0, 16], sizes = [8, 8], strides = [1, 1]} : vector<8x32xbf16> to vector<8x8xbf16>
    %51 = vector.extract_strided_slice %15 {offsets = [0, 16], sizes = [16, 8], strides = [1, 1]} : vector<16x64xbf16> to vector<16x8xbf16>
    %52 = vector.extract_strided_slice %15 {offsets = [0, 48], sizes = [16, 8], strides = [1, 1]} : vector<16x64xbf16> to vector<16x8xbf16>
    %cst_23 = arith.constant dense<0.000000e+00> : vector<8x16xf32>
    %53 = tpu.matmul %50, %51, %cst_23 {dimension_numbers = #tpu.dot_dimension_numbers<[1], [1], [0], [0], [0, 0, 1, 0], [], []>} : vector<8x8xbf16>, vector<16x8xbf16>, vector<8x16xf32> -> vector<8x16xf32>
    %cst_24 = arith.constant dense<0xFF800000> : vector<8xf32>
    %54 = vector.multi_reduction <maximumf>, %53, %cst_24 [1] : vector<8x16xf32> to vector<8xf32>
    %55 = vector.shape_cast %54 : vector<8xf32> to vector<8x1xf32>
    %56 = vector.broadcast %55 : vector<8x1xf32> to vector<8x16xf32>
    %57 = arith.subf %53, %56 : vector<8x16xf32>
    %58 = math.exp %57 : vector<8x16xf32>
    %cst_25 = arith.constant dense<0.000000e+00> : vector<8xf32>
    %59 = vector.multi_reduction <add>, %58, %cst_25 [1] : vector<8x16xf32> to vector<8xf32>
    %60 = vector.shape_cast %59 : vector<8xf32> to vector<8x1xf32>
    %61 = tpu.reciprocal %60 {approx = true} : vector<8x1xf32> -> vector<8x1xf32>
    %62 = vector.broadcast %61 : vector<8x1xf32> to vector<8x16xf32>
    %63 = arith.mulf %58, %62 : vector<8x16xf32>
    %64 = arith.truncf %63 : vector<8x16xf32> to vector<8x16xbf16>
    %cst_26 = arith.constant dense<0.000000e+00> : vector<8x8xf32>
    %65 = tpu.matmul %64, %52, %cst_26 {dimension_numbers = #tpu.dot_dimension_numbers<[1], [0], [0], [1], [0, 0, 1, 1], [], []>} : vector<8x16xbf16>, vector<16x8xbf16>, vector<8x8xf32> -> vector<8x8xf32>
    %c0_27 = arith.constant 0 : index
    %c16 = arith.constant 16 : index
    %66 = vector.load %arg10[%c0_27, %c16] : memref<8x32xf32, #tpu.memory_space<vmem>>, vector<8x8xf32>
    tpu.vector_store %arg10[%c0_27, %c16], %65 {strides = array<i32>} : memref<8x32xf32, #tpu.memory_space<vmem>>, vector<8x8xf32>,
    %67 = vector.extract_strided_slice %9 {offsets = [0, 24], sizes = [8, 8], strides = [1, 1]} : vector<8x32xbf16> to vector<8x8xbf16>
    %68 = vector.extract_strided_slice %15 {offsets = [0, 24], sizes = [16, 8], strides = [1, 1]} : vector<16x64xbf16> to vector<16x8xbf16>
    %69 = vector.extract_strided_slice %15 {offsets = [0, 56], sizes = [16, 8], strides = [1, 1]} : vector<16x64xbf16> to vector<16x8xbf16>
    %cst_28 = arith.constant dense<0.000000e+00> : vector<8x16xf32>
    %70 = tpu.matmul %67, %68, %cst_28 {dimension_numbers = #tpu.dot_dimension_numbers<[1], [1], [0], [0], [0, 0, 1, 0], [], []>} : vector<8x8xbf16>, vector<16x8xbf16>, vector<8x16xf32> -> vector<8x16xf32>
    %cst_29 = arith.constant dense<0xFF800000> : vector<8xf32>
    %71 = vector.multi_reduction <maximumf>, %70, %cst_29 [1] : vector<8x16xf32> to vector<8xf32>
    %72 = vector.shape_cast %71 : vector<8xf32> to vector<8x1xf32>
    %73 = vector.broadcast %72 : vector<8x1xf32> to vector<8x16xf32>
    %74 = arith.subf %70, %73 : vector<8x16xf32>
    %75 = math.exp %74 : vector<8x16xf32>
    %cst_30 = arith.constant dense<0.000000e+00> : vector<8xf32>
    %76 = vector.multi_reduction <add>, %75, %cst_30 [1] : vector<8x16xf32> to vector<8xf32>
    %77 = vector.shape_cast %76 : vector<8xf32> to vector<8x1xf32>
    %78 = tpu.reciprocal %77 {approx = true} : vector<8x1xf32> -> vector<8x1xf32>
    %79 = vector.broadcast %78 : vector<8x1xf32> to vector<8x16xf32>
    %80 = arith.mulf %75, %79 : vector<8x16xf32>
    %81 = arith.truncf %80 : vector<8x16xf32> to vector<8x16xbf16>
    %cst_31 = arith.constant dense<0.000000e+00> : vector<8x8xf32>
    %82 = tpu.matmul %81, %69, %cst_31 {dimension_numbers = #tpu.dot_dimension_numbers<[1], [0], [0], [1], [0, 0, 1, 1], [], []>} : vector<8x16xbf16>, vector<16x8xbf16>, vector<8x8xf32> -> vector<8x8xf32>
    %c0_32 = arith.constant 0 : index
    %c24 = arith.constant 24 : index
    %83 = vector.load %arg10[%c0_32, %c24] : memref<8x32xf32, #tpu.memory_space<vmem>>, vector<8x8xf32>
    tpu.vector_store %arg10[%c0_32, %c24], %82 {strides = array<i32>} : memref<8x32xf32, #tpu.memory_space<vmem>>, vector<8x8xf32>,
    %c0_33 = arith.constant 0 : index
    %c0_34 = arith.constant 0 : index
    %84 = vector.load %arg10[%c0_33, %c0_34] : memref<8x32xf32, #tpu.memory_space<vmem>>, vector<8x32xf32>
    %85 = arith.truncf %84 : vector<8x32xf32> to vector<8x32xbf16>
    %c0_35 = arith.constant 0 : index
    %c0_36 = arith.constant 0 : index
    %86 = vector.load %arg7[%c0_35, %c0_36] : memref<32x128xbf16, #tpu.memory_space<vmem>>, vector<32x128xbf16>
    %cst_37 = arith.constant dense<0.000000e+00> : vector<8x128xf32>
    %87 = tpu.matmul %85, %86, %cst_37 {dimension_numbers = #tpu.dot_dimension_numbers<[1], [0], [0], [1], [0, 0, 1, 1], [], []>} : vector<8x32xbf16>, vector<32x128xbf16>, vector<8x128xf32> -> vector<8x128xf32>
    %c0_38 = arith.constant 0 : index
    %c0_39 = arith.constant 0 : index
    %88 = vector.load %arg8[%c0_38, %c0_39] : memref<1x128xf32, #tpu.memory_space<vmem>>, vector<1x128xf32>
    %89 = vector.broadcast %88 : vector<1x128xf32> to vector<8x128xf32>
    %90 = arith.addf %87, %89 : vector<8x128xf32>
    %c0_40 = arith.constant 0 : index
    %c0_41 = arith.constant 0 : index
    %91 = vector.load %arg9[%c0_40, %c0_41] : memref<8x128xf32, #tpu.memory_space<vmem>>, vector<8x128xf32>
    tpu.vector_store %arg9[%c0_40, %c0_41], %90 {strides = array<i32>} : memref<8x128xf32, #tpu.memory_space<vmem>>, vector<8x128xf32>,
    return
  }
  func.func @transform_0(%arg0: i32) -> (i32, i32) {
    %c0_i32 = arith.constant 0 : i32
    %c0_i32_0 = arith.constant 0 : i32
    return %arg0, %c0_i32 : i32, i32
  }
  func.func @transform_1(%arg0: i32) -> (i32, i32) {
    %c0_i32 = arith.constant 0 : i32
    %c0_i32_0 = arith.constant 0 : i32
    return %arg0, %c0_i32 : i32, i32
  }
  func.func @transform_2(%arg0: i32) -> (i32, i32) {
    %c0_i32 = arith.constant 0 : i32
    %c0_i32_0 = arith.constant 0 : i32
    %c0_i32_1 = arith.constant 0 : i32
    return %c0_i32, %c0_i32_0 : i32, i32
  }
  func.func @transform_3(%arg0: i32) -> (i32, i32) {
    %c0_i32 = arith.constant 0 : i32
    %c0_i32_0 = arith.constant 0 : i32
    %c0_i32_1 = arith.constant 0 : i32
    return %c0_i32, %c0_i32_0 : i32, i32
  }
  func.func @transform_4(%arg0: i32) -> (i32, i32) {
    %c0_i32 = arith.constant 0 : i32
    %c0_i32_0 = arith.constant 0 : i32
    %c0_i32_1 = arith.constant 0 : i32
    return %c0_i32, %c0_i32_0 : i32, i32
  }
  func.func @transform_5(%arg0: i32) -> (i32, i32) {
    %c0_i32 = arith.constant 0 : i32
    %c0_i32_0 = arith.constant 0 : i32
    %c0_i32_1 = arith.constant 0 : i32
    return %c0_i32, %c0_i32_0 : i32, i32
  }
  func.func @transform_6(%arg0: i32) -> (i32, i32) {
    %c0_i32 = arith.constant 0 : i32
    %c0_i32_0 = arith.constant 0 : i32
    %c0_i32_1 = arith.constant 0 : i32
    return %c0_i32, %c0_i32_0 : i32, i32
  }
  func.func @transform_7(%arg0: i32) -> (i32, i32) {
    %c0_i32 = arith.constant 0 : i32
    %c0_i32_0 = arith.constant 0 : i32
    %c0_i32_1 = arith.constant 0 : i32
    return %c0_i32, %c0_i32_0 : i32, i32
  }
  func.func @transform_8(%arg0: i32) -> (i32, i32) {
    %c0_i32 = arith.constant 0 : i32
    %c0_i32_0 = arith.constant 0 : i32
    return %arg0, %c0_i32 : i32, i32
  }
}

</mosaic_0001>

<bundles_post_ra>
// kernel: tpu_custom_call.1
= control target key start
LH: loop header
LB: loop body
LE: loop exit
PB: predicated region body
PF: predicated region fallthrough
CT: control target
= control target key end

     0   :  { %13 = vsyncpa [#allocation4], 0  ;;  %s1592_s0 = inlined_call_operand.vmem [shape: f32[32,24], index: 0, kind: input, shape index: {}]   ;;  %s1593_s1 = inlined_call_operand.vmem [shape: f32[16,32], index: 1, kind: input, shape index: {}]   ;;  %s1594_s2 = inlined_call_operand.vmem [shape: bf16[32,32], index: 2, kind: input, shape index: {}]   ;;  %s1595_s3 = inlined_call_operand.vmem [shape: f32[1,32], index: 3, kind: input, shape index: {}]   ;;  %s1596_s4 = inlined_call_operand.vmem [shape: bf16[24,64], index: 4, kind: input, shape index: {}]   ;;  %s1597_s5 = inlined_call_operand.vmem [shape: f32[1,64], index: 5, kind: input, shape index: {}]   ;;  %s1598_s6 = inlined_call_operand.vmem [shape: bf16[32,128], index: 6, kind: input, shape index: {}]   ;;  %s1599_s7 = inlined_call_operand.vmem [shape: f32[1,128], index: 7, kind: input, shape index: {}]   ;;  %s1600_s8 = inlined_call_operand.hbm [shape: f32[16,128], index: 8, kind: output, shape index: {}]  }
   0x1   :  { %15 = vsyncpa [#allocation4 + $0x1], 0  ;;  %s1393_s27 = smov 0   ;;  %s1395_s28 = smov 0  }
   0x2   :  { %s1397_s29 = smov 0   ;;  %s1399_s30 = smov 0  }
   0x3 LB: > { %s1414_s9 = sadd.s32 4294967295, %s1333_s30   ;;  %s1071_s10 = sadd.s32 4294967294, %s1333_s30   ;;  %s1333_s30 = sphi %s1399_s30, %s1606_s30   ;;  %s1329_s29 = sphi %s1397_s29, %s1605_s29   ;;  %s1325_s28 = sphi %s1395_s28, %s1604_s28   ;;  %s1321_s27 = sphi %s1393_s27, %s1603_s27  }
   0x4   : > { %s1418_s11 = sadd.s32 1, %s1333_s30   ;;  %s206_s12 = sadd.s32 1, %s1329_s29 }
   0x5   : > { %s203_s13 = ssub.s32 %s1333_s30, %s1418_s11  ;;  %p216_p0 = scmp.ne.s32.totalorder %s1329_s29, %s1325_s28 }
   0x6   : > { %p204_p1 = scmp.eq.s32.totalorder %s203_s13, 0  ;;  %p217_p2 = scmp.eq.s32.totalorder %s1414_s9, 1 }
   0x7   : > { %p222_p3 = scmp.ne.s32.totalorder %s1325_s28, %s1321_s27  ;;  %p223_p4 = scmp.eq.s32.totalorder %s1071_s10, 1 }
   0x8   : > { %s1429_s14 = scalar_select %p204_p1, %s1329_s29, %s206_s12  }
   0x9   : > { %p1431_p5 = por %p217_p2, %p216_p0  ;;  %p1435_p6 = por %p223_p4, %p222_p3 }
   0xa   : > { %p1074_p7 = scmp.ge.s32.totalorder %s1333_s30, 1  ;;  %p275_p8 = scmp.lt.s32.totalorder %s1333_s30, 3 }
   0xc   : > { %p276_p9 = pnand %p1074_p7, %p275_p8 }
   0xd   : > { %s1076_s23 = sshll.u32 (!%p276_p9), %s1414_s9, 1  ;;  %p319_p11 = scmp.lt.s32.totalorder (!%p276_p9), %s1414_s9, 1 }
   0xe   : > { %279 = sbr.rel (%p276_p9) target bundleno = 1408 (0x580), region = 52  ;;  %p314_p10 = scmp.lt.s32.totalorder (!%p276_p9), %s1076_s23, 3 }
   0xf   : > { %s1339_s12 = smov (!%p276_p9), 104   ;;  %s1340_s13 = smov (!%p276_p9), 96  }
  0x10   : > { %s1343_s19 = smov (!%p276_p9), 88   ;;  %s1344_s20 = smov (!%p276_p9), 8  }
  0x11   : > { %s1345_s25 = smov (!%p276_p9), 16  }
  0x13   : > { %v1251_v0 = vld [vmem:[%s1596_s4 + $0x8] ss:$0 sps:$4 sm:$0xff]   ;;  %vm420_vm0 = vcmask 1043456   ;;  %v1335_v1 = vmov 0.0   ;;  %vm1336_vm1 = vmmov 0   ;;  %v1252_v4 = vld [vmem:[%s1596_s4] sm:$0xff]  }
  0x14   : > { %1136 = vmatprep.subr.bf16.mxu1 %v1335_v1  ;;  %1128 = vmatprep.subr.bf16.mxu0 %v1335_v1  ;;  %v422_v2 = vsel %vm420_vm0, %v1251_v0, 0  ;;  %v1253_v3 = vld [vmem:[%s1594_s2 + $0x8] sm:$0xff]   ;;  %v1254_v5 = vld [vmem:[%s1594_s2] sm:$0xff]   ;;  %s1608_s23 = smov (!%p314_p10, %s1076_s23), 3  ;;  %vm416_vm2 = vcmask 195584   ;;  %vm352_vm3 = vcmask 261120  }
  0x15   : > { %1140 = vmatprep.mubr.msk.bf16.mxu1 %vm1336_vm1, %v1335_v1  ;;  %1132 = vmatprep.mubr.msk.bf16.mxu0 %vm1336_vm1, %v1335_v1  ;;  %s320_s26 = scalar_select %p319_p11, %s1414_s9, 1  ;;  %v1083_v13 = vld [vmem:[%s1597_s5] ss:$0 sm:$0xff]  ;;  %vm466_vm4 = vcmask 64512   ;;  %vm513_vm5 = vcmask 130048   ;;  %vm687_vm6 = vcmask 130112  }
  0x16   : > { %1137 = vmatpush3.bf16.msra.mxu1 %v422_v2  ;;  %1129 = vmatpush3.bf16.msra.mxu0 %v1253_v3  ;;  %s1077_s10 = sshll.u32 %s1608_s23, 3  ;;  %v1079_v15 = vld [vmem:[%s1595_s3] ss:$0 sm:$0xff]  ;;  %vm801_vm7 = vcmask 195712   ;;  %vm915_vm8 = vcmask 261312  }
  0x17   : > { %1138 = vmatprep.subr.bf16.mxu1 %v1335_v1  ;;  %1130 = vmatprep.subr.bf16.mxu0 %v1335_v1  ;;  %s317_s17 = scalar_lea.vmem %s1592_s0, %s1077_s10  ;;  %s1078_s18 = sshll.u32 %s320_s26, 3 }
  0x18   : > { %v324_v6 = vld [vmem:[%s317_s17] sm:$0xff]  ;;  %v325_v7 = vld [vmem:[%s317_s17 + $0x8] sm:$0xff]  ;;  %s322_s21 = scalar_lea.vmem %s1593_s1, %s1078_s18  ;;  %s1337_s26 = smov 112  }
  0x19   : > { %v326_v8 = vpack.c.bf16 %v325_v7, %v324_v6  ;;  %v327_v9 = vld [vmem:[%s322_s21] sm:$0xff]  ;;  %s1338_s10 = smov 120   ;;  %s1341_s17 = smov 80  }
  0x1a   : > { %1139 = vmatpush3.bf16.msra.mxu1 %v1252_v4  ;;  %1131 = vmatpush3.bf16.msra.mxu0 %v1254_v5  ;;  %v328_v10 = vpack.c.bf16 %v327_v9, %v327_v9  ;;  %s1342_s18 = smov 72  }
  0x1b   : > { %1150 = vmatprep.subr.bf16.mxu1 %v1335_v1  ;;  %1144 = vmatprep.subr.bf16.mxu0 %v1335_v1 }
  0x1d   : > { %1141 = vmatmul.mubr.msk.bf16.vlgmr.msra.gmra.mxu1 %vm416_vm2, %v326_v8  ;;  %1133 = vmatmul.mubr.msk.bf16.vlgmr.msra.gmra.mxu0 %vm352_vm3, %v328_v10 }
  0x1e   : > { %1152 = vmatprep.mubr.msk.bf16.mxu1 %vm1336_vm1, %v1335_v1  ;;  %1146 = vmatprep.mubr.msk.bf16.mxu0 %vm1336_vm1, %v1335_v1 }
  0xdd   : > { %v458_v11 = vpop.f32.mrf.mxu1  ;;  %v390_v12 = vpop.f32.mrf.mxu0 }
  0xde   : > { %v459_v18 = vadd.f32 %v1083_v13, %v458_v11  ;;  %v391_v20 = vadd.f32 %v1079_v15, %v390_v12 }
  0xdf   : > { %v1142_v14 = vpop.f32.mrf.mxu1  ;;  %v1134_v16 = vpop.f32.mrf.mxu0 }
  0xe0   : > { %v396_v25 = vpack.c.bf16 %v391_v20, %v391_v20 }
  0xe1   : > { %v461_v17 = vpop.f32.mrf.mxu1  ;;  %v393_v21 = vpop.f32.mrf.mxu0 }
  0xe2   : > { %v462_v19 = vadd.f32 %v1083_v13, %v461_v17 }
  0xe3   : > { %v1143_v22 = vpop.f32.mrf.mxu1  ;;  %v1135_v24 = vpop.f32.mrf.mxu0 }
  0xe4   : > { %v1483_v23 = vpack.c.bf16 %v462_v19, %v459_v18 }
  0xe6   : > { %691 = vrot.lane.b32.xlu1 %v1483_v23, %s1337_s26  ;;  %577 = vrot.lane.b32.xlu0 %v1483_v23, %s1338_s10  ;;  %v471_v26 = vsel %vm466_vm4, %v1483_v23, 0 }
  0xe7   : > { %1145 = vmatpush3.bf16.xpose.msra.mxu0 %v471_v26 }
  0xe8   : > { %1156 = vmatprep.subr.bf16.mxu0 %v1335_v1 }
  0xea   : > { %689 = vrot.lane.b32.xlu1 %v396_v25, %s1337_s26  ;;  %575 = vrot.lane.b32.xlu0 %v396_v25, %s1338_s10  ;;  %s1346_s26 = smov 24   ;;  %s310_s10 = sand.u32 1, %s1325_s28  }
  0xeb   : > { %s987_s24 = scalar_lea.sflag [#allocation4], %s310_s10 }
  0xee   : > { %803 = vrot.lane.b32.xlu1 %v396_v25, %s1339_s12  ;;  %805 = vrot.lane.b32.xlu0 %v1483_v23, %s1339_s12  ;;  %s1075_s12 = sshll.u32 %s310_s10, 3 }
  0xef   : > { %1147 = vmatmul.mubr.msk.bf16.vlgmr.msra.gmra.mxu0 %vm466_vm4, %v396_v25 }
  0xf0   : > { %1158 = vmatprep.mubr.msk.bf16.mxu0 %vm1336_vm1, %v1335_v1 }
 0x158   : > { %v578_v27 = vpop.permute.xlu0 %577  ;;  %v692_v29 = vpop.permute.xlu1 %691 }
 0x159   : > { %v583_v28 = vsel %vm466_vm4, %v578_v27, 0  ;;  %v697_v31 = vsel %vm466_vm4, %v692_v29, 0 }
 0x15a   : > { %1157 = vmatpush3.bf16.xpose.msra.mxu0 %v583_v28 }
 0x15b   : > { %1168 = vmatprep.subr.bf16.mxu0 %v1335_v1 }
 0x15c   : > { %v576_v30 = vpop.permute.xlu0 %575  ;;  %v690_v33 = vpop.permute.xlu1 %689 }
 0x160   : > { %v806_v32 = vpop.permute.xlu0 %805  ;;  %v804_v35 = vpop.permute.xlu1 %803 }
 0x161   : > { %1159 = vmatmul.mubr.msk.bf16.vlgmr.msra.gmra.mxu0 %vm466_vm4, %v576_v30  ;;  %v811_v34 = vsel %vm466_vm4, %v806_v32, 0 }
 0x162   : > { %1169 = vmatpush3.bf16.xpose.msra.mxu0 %v697_v31  ;;  %1170 = vmatprep.mubr.msk.bf16.mxu0 %vm1336_vm1, %v1335_v1 }
 0x163   : > { %1180 = vmatprep.subr.bf16.mxu0 %v1335_v1 }
 0x169   : > { %1171 = vmatmul.mubr.msk.bf16.vlgmr.msra.gmra.mxu0 %vm466_vm4, %v690_v33 }
 0x16a   : > { %1181 = vmatpush3.bf16.xpose.msra.mxu0 %v811_v34  ;;  %1182 = vmatprep.mubr.msk.bf16.mxu0 %vm1336_vm1, %v1335_v1 }
 0x16b   : > { %1192 = vmatprep.subr.bf16.mxu0 %v1335_v1 }
 0x171   : > { %1183 = vmatmul.mubr.msk.bf16.vlgmr.msra.gmra.mxu0 %vm466_vm4, %v804_v35 }
 0x172   : > { %1196 = vmatprep.mubr.msk.bf16.mxu0 %vm1336_vm1, %v1335_v1 }
 0x1af   : > { %v507_v36 = vpop.f32.mrf.mxu0 }
 0x1b0   : > { %v514_v37 = vsel %vm513_vm5, %v507_v36, -inf }
 0x1b1   : > { %515 = vmax.xlane.f32.xlu0 %v514_v37  ;;  %v1148_v38 = vpop.f32.mrf.mxu0 }
 0x1b3   : > { %v510_v39 = vpop.f32.mrf.mxu0 }
 0x1b5   : > { %v1149_v40 = vpop.f32.mrf.mxu0 }
 0x1b6   : > { %v1255_v40 = vld [vmem:[%s1598_s6 + $0x8] sm:$0xff]  }
 0x1b7   : > { %1193 = vmatpush3.bf16.msra.mxu0 %v1255_v40 }
 0x1b8   : > { %1194 = vmatprep.subr.bf16.mxu0 %v1335_v1 }
 0x221   : > { %v619_v41 = vpop.f32.mrf.mxu0 }
 0x222   : > { %v625_v42 = vsel %vm513_vm5, %v619_v41, -inf }
 0x223   : > { %626 = vmax.xlane.f32.xlu1 %v625_v42  ;;  %v1160_v43 = vpop.f32.mrf.mxu0  ;;  %v1256_v42 = vld [vmem:[%s1598_s6] sm:$0xff]  }
 0x224   : > { %1195 = vmatpush3.bf16.msra.mxu0 %v1256_v42 }
 0x225   : > { %v622_v44 = vpop.f32.mrf.mxu0 }
 0x227   : > { %v1161_v45 = vpop.f32.mrf.mxu0 }
 0x229   : > { %v733_v46 = vpop.f32.mrf.mxu0 }
 0x22a   : > { %v739_v47 = vsel %vm513_vm5, %v733_v46, -inf }
 0x22b   : > { %740 = vmax.xlane.f32.xlu0 %v739_v47  ;;  %v1172_v48 = vpop.f32.mrf.mxu0 }
 0x22d   : > { %v736_v49 = vpop.f32.mrf.mxu0 }
 0x22f   : > { %v1173_v50 = vpop.f32.mrf.mxu0 }
 0x231   : > { %v847_v51 = vpop.f32.mrf.mxu0 }
 0x232   : > { %v853_v52 = vsel %vm513_vm5, %v847_v51, -inf }
 0x233   : > { %854 = vmax.xlane.f32.xlu0 %v853_v52  ;;  %v1184_v53 = vpop.f32.mrf.mxu0 }
 0x235   : > { %v850_v54 = vpop.f32.mrf.mxu0 }
 0x237   : > { %v1185_v55 = vpop.f32.mrf.mxu0 }
 0x238   : > { %v1095_v55 = vld [vmem:[%s1599_s7] ss:$0 sm:$0xff] }
 0x23a   : > { %v516_v56 = vpop.xlane.xlu0 %515 }
 0x23b   : > { %v517_v57 = vsub.f32 %v507_v36, %v516_v56 }
 0x23d   : > { %v518_v58 = vmul.f32 1.442695, %v517_v57 }
 0x23f   : > { %1257 = vpow2.f32 %v518_v58 }
 0x24c   : > { %v1258_v59 = vpop.eup %1257 }
 0x24d   : > { %v520_v60 = vsel %vm513_vm5, %v1258_v59, 0.0 }
 0x24e   : > { %521 = vadd.xlane.f32.xlu1 %v520_v60 }
 0x25f   : > { %527 = vrot.lane.b32.xlu1 %v1483_v23, %s1340_s13 }
 0x2ac   : > { %v627_v61 = vpop.xlane.xlu1 %626 }
 0x2ad   : > { %v628_v62 = vsub.f32 %v619_v41, %v627_v61 }
 0x2af   : > { %v629_v63 = vmul.f32 1.442695, %v628_v62 }
 0x2b1   : > { %1259 = vpow2.f32 %v629_v63 }
 0x2b4   : > { %v741_v0 = vpop.xlane.xlu0 %740 }
 0x2b5   : > { %v742_v2 = vsub.f32 %v733_v46, %v741_v0 }
 0x2b7   : > { %v743_v3 = vmul.f32 1.442695, %v742_v2 }
 0x2b9   : > { %1261 = vpow2.f32 %v743_v3 }
 0x2bc   : > { %v855_v4 = vpop.xlane.xlu0 %854 }
 0x2bd   : > { %v856_v5 = vsub.f32 %v847_v51, %v855_v4 }
 0x2be   : > { %v1260_v6 = vpop.eup %1259 }
 0x2bf   : > { %v857_v7 = vmul.f32 1.442695, %v856_v5  ;;  %v631_v8 = vsel %vm513_vm5, %v1260_v6, 0.0 }
 0x2c0   : > { %632 = vadd.xlane.f32.xlu0 %v631_v8 }
 0x2c1   : > { %1263 = vpow2.f32 %v857_v7 }
 0x2c6   : > { %v1262_v9 = vpop.eup %1261 }
 0x2c7   : > { %v745_v10 = vsel %vm513_vm5, %v1262_v9, 0.0 }
 0x2c8   : > { %746 = vadd.xlane.f32.xlu1 %v745_v10 }
 0x2ce   : > { %v1264_v11 = vpop.eup %1263 }
 0x2cf   : > { %v859_v12 = vsel %vm513_vm5, %v1264_v11, 0.0 }
 0x2d0   : > { %860 = vadd.xlane.f32.xlu0 %v859_v12 }
 0x2d7   : > { %v522_v13 = vpop.xlane.xlu1 %521 }
 0x2d8   : > { %1265 = vrcp.f32 %v522_v13 }
 0x2d9   : > { %751 = vrot.lane.b32.xlu1 %v1483_v23, %s1341_s17 }
 0x2db   : > { %v528_v14 = vpop.permute.xlu1 %527 }
 0x2dc   : > { %1151 = vmatpush3.bf16.msra.mxu1 %v528_v14 }
 0x2dd   : > { %865 = vrot.lane.b32.xlu1 %v1483_v23, %s1342_s18  ;;  %1162 = vmatprep.subr.bf16.mxu1 %v1335_v1  ;;  %s1100_s18 = sshll.u32 %s1414_s9, 7  ;;  %s1347_s9 = smov [#allocation3]  }
 0x2de   : > { %s1551_s23 = scalar_lea.hbm %s1600_s8, %s1100_s18 }
 0x2e5   : > { %v1266_v15 = vpop.eup %1265 }
 0x2e6   : > { %637 = vrot.lane.b32.xlu0 %v1483_v23, %s1343_s19  ;;  %v524_v16 = vmul.f32 %v1266_v15, %v1258_v59  ;;  %s312_s19 = scalar_lea.vmem [#allocation3], %s1075_s12 }
 0x2e8   : > { %v525_v17 = vpack.c.bf16 %v524_v16, %v524_v16 }
 0x2ea   : > { %1153 = vmatmul.mubr.msk.bf16.vlgmr.msra.gmra.mxu1 %vm513_vm5, %v525_v17 }
 0x2eb   : > { %1164 = vmatprep.mubr.msk.bf16.mxu1 %vm1336_vm1, %v1335_v1 }
 0x349   : > { %v633_v18 = vpop.xlane.xlu0 %632 }
 0x34a   : > { %1267 = vrcp.f32 %v633_v18 }
 0x351   : > { %v747_v19 = vpop.xlane.xlu1 %746 }
 0x352   : > { %1269 = vrcp.f32 %v747_v19 }
 0x355   : > { %v752_v26 = vpop.permute.xlu1 %751 }
 0x357   : > { %v1268_v20 = vpop.eup %1267 }
 0x358   : > { %v635_v22 = vmul.f32 %v1268_v20, %v1260_v6 }
 0x359   : > { %v861_v21 = vpop.xlane.xlu0 %860  ;;  %v866_v30 = vpop.permute.xlu1 %865 }
 0x35a   : > { %1271 = vrcp.f32 %v861_v21  ;;  %v636_v25 = vpack.c.bf16 %v635_v22, %v635_v22 }
 0x35d   : > { %v638_v24 = vpop.permute.xlu0 %637 }
 0x35e   : > { %1163 = vmatpush3.bf16.msra.mxu1 %v638_v24 }
 0x35f   : > { %1174 = vmatprep.subr.bf16.mxu1 %v1335_v1  ;;  %v1270_v23 = vpop.eup %1269 }
 0x360   : > { %v749_v27 = vmul.f32 %v1270_v23, %v1262_v9 }
 0x361   : > { %1165 = vmatmul.mubr.msk.bf16.vlgmr.msra.gmra.mxu1 %vm513_vm5, %v636_v25 }
 0x362   : > { %1175 = vmatpush3.bf16.msra.mxu1 %v752_v26  ;;  %1176 = vmatprep.mubr.msk.bf16.mxu1 %vm1336_vm1, %v1335_v1  ;;  %v750_v28 = vpack.c.bf16 %v749_v27, %v749_v27 }
 0x363   : > { %1186 = vmatprep.subr.bf16.mxu1 %v1335_v1 }
 0x367   : > { %v1272_v29 = vpop.eup %1271 }
 0x368   : > { %v863_v31 = vmul.f32 %v1272_v29, %v1264_v11 }
 0x369   : > { %1177 = vmatmul.mubr.msk.bf16.vlgmr.msra.gmra.mxu1 %vm513_vm5, %v750_v28 }
 0x36a   : > { %1187 = vmatpush3.bf16.msra.mxu1 %v866_v30  ;;  %1188 = vmatprep.mubr.msk.bf16.mxu1 %vm1336_vm1, %v1335_v1  ;;  %v864_v32 = vpack.c.bf16 %v863_v31, %v863_v31 }
 0x371   : > { %1189 = vmatmul.mubr.msk.bf16.vlgmr.msra.gmra.mxu1 %vm513_vm5, %v864_v32 }
 0x3aa   : > { %v567_v33 = vpop.f32.mrf.mxu1 }
 0x3ab   : > { %573 = vst.msk [vmem:[#allocation2] sm:$0xff] %vm466_vm4, %v567_v33 }
 0x3ac   : > { %v1154_v34 = vpop.f32.mrf.mxu1 }
 0x3ae   : > { %v570_v35 = vpop.f32.mrf.mxu1 }
 0x3b0   : > { %v1155_v36 = vpop.f32.mrf.mxu1 }
 0x421   : > { %v677_v37 = vpop.f32.mrf.mxu1 }
 0x422   : > { %684 = vrot.lane.b32.xlu0 %v677_v37, %s1344_s20  ;;  %s1000_s20 = sshll.u32 %s312_s19, 4  ;;  %s1553_s20 = int_to_ptr.vmem [resolvable:$true] %s1000_s20 }
 0x423   : > { %v1166_v38 = vpop.f32.mrf.mxu1 }
 0x425   : > { %v680_v39 = vpop.f32.mrf.mxu1 }
 0x427   : > { %v1167_v41 = vpop.f32.mrf.mxu1 }
 0x429   : > { %v791_v43 = vpop.f32.mrf.mxu1 }
 0x42a   : > { %798 = vrot.lane.b32.xlu1 %v791_v43, %s1345_s25  ;;  %s1273_s25 = scalar_lea.vmem %s1553_s20, 128 }
 0x42b   : > { %v1178_v44 = vpop.f32.mrf.mxu1  ;;  %p1274_p12 = scmp.ne.s32.totalorder %s1553_s20, %s1273_s25 }
 0x42d   : > { %v794_v45 = vpop.f32.mrf.mxu1  ;;  %p1275_p13 = pnand %p1274_p12, %p1431_p5 }
 0x42f   : > { %v1179_v46 = vpop.f32.mrf.mxu1  ;;  %p1276_p0 = pneg %p1275_p13 }
 0x431   : > { %v905_v47 = vpop.f32.mrf.mxu1 }
 0x432   : > { %912 = vrot.lane.b32.xlu0 %v905_v47, %s1346_s26  ;;  %s1277_s26 = sshll.u32 %s1347_s9, 4  ;;  %s1278_s26 = int_to_ptr.vmem [resolvable:$false] %s1277_s26 }
 0x433   : > { %v1190_v48 = vpop.f32.mrf.mxu1  ;;  %s1279_s12 = scalar_lea.vmem %s1278_s26, 256  ;;  %p1280_p1 = scmp.lt.s32.totalorder %s1553_s20, %s1278_s26 }
 0x434   : > { %p1281_p2 = scmp.lt.s32.totalorder %s1279_s12, %s1273_s25 }
 0x435   : > { %v908_v49 = vpop.f32.mrf.mxu1 }
 0x436   : > { %p1282_p3 = por %p1281_p2, %p1280_p1 }
 0x437   : > { %v1191_v50 = vpop.f32.mrf.mxu1 }
 0x438   : > { %p1283_p4 = pnand %p1282_p3, %p1276_p0 }
 0x494   : > { %v685_v51 = vpop.permute.xlu0 %684 }
 0x495   : > { %688 = vst.msk [vmem:[#allocation2] sm:$0xff] %vm687_vm6, %v685_v51 }
 0x49c   : > { %v799_v1 = vpop.permute.xlu1 %798 }
 0x49d   : > { %802 = vst.msk [vmem:[#allocation2] sm:$0xff] %vm801_vm7, %v799_v1 }
 0x4a4   : > { %v913_v52 = vpop.permute.xlu0 %912 }
 0x4a5   : > { %916 = vst.msk [vmem:[#allocation2] sm:$0xff] %vm915_vm8, %v913_v52 }
 0x4ac   : > { %v917_v53 = vld [vmem:[#allocation2] sm:$0xff] }
 0x4ad   : > { %v918_v54 = vpack.c.bf16 %v917_v53, %v917_v53 }
 0x4af   : > { %1197 = vmatmul.mubr.msk.bf16.vlgmr.msra.gmra.mxu0 %vm352_vm3, %v918_v54 }
 0x56f   : > { %v979_v56 = vpop.f32.mrf.mxu0 }
 0x570   : > { %v980_v57 = vadd.f32 %v1095_v55, %v979_v56 }
 0x571   : > { %v1198_v58 = vpop.f32.mrf.mxu0 }
 0x572   : > { %985 = vst [vmem:[%s312_s19] sm:$0xff] %v980_v57 }
 0x573   : > { %v982_v59 = vpop.f32.mrf.mxu0 }
 0x574   : > { %1286 = shalt.err (!%p1283_p4)
}
 0x575   : > { %s1287_s13 = scalar_lea.hbm %s1551_s23, 128  ;;  %s1291_s18 = scalar_lea.hbm %s1600_s8, 256 }
 0x576   : > { %p1288_p7 = scmp.ne.s32.totalorder %s1551_s23, %s1287_s13  ;;  %p1292_p10 = scmp.lt.s32.totalorder %s1551_s23, %s1600_s8 }
 0x577   : > { %p1293_p11 = scmp.lt.s32.totalorder %s1291_s18, %s1287_s13 }
 0x578   : > { %p1289_p8 = pnand %p1288_p7, %p1431_p5 }
 0x579   : > { %p1294_p12 = por %p1293_p11, %p1292_p10 }
 0x57a   : > { %p1290_p9 = pneg %p1289_p8 }
 0x57c   : > { %p1295_p13 = pnand %p1294_p12, %p1290_p9 }
 0x57e   : > { %1298 = shalt.err (!%p1295_p13)
}
 0x57f   : > { %1200 = dma.vmem_to_hbm [thread:$0]  (%p1431_p5), %s1553_s20, 128, %s1551_s23, %s987_s24   ;;  %v1199_v60 = vpop.f32.mrf.mxu0 }
 0x580 PF: > { %p1206_p0 = scmp.ge.s32.totalorder %s1333_s30, 2  ;;  %s1012_s22 = sand.u32 1, %s1321_s27  }
 0x581   : > { %s1013_s25 = scalar_lea.sflag [#allocation4], %s1012_s22 }
 0x582   : > { %p1203_p1 = pnand %p1206_p0, %p1435_p6 }
 0x584   : > { %p1204_p2 = pneg %p1203_p1 }
 0x586   : > { %1316 = dma.done.wait (%p1204_p2), %s1013_s25, 128  }
 0x587   : > { %1318 = vsyncadd (%p1204_p2), %s1013_s25, 4294967168  ;;  %p18_p3 = scmp.ge.s32.totalorder %s1418_s11, 4   ;;  %s1603_s27 = smov %s1325_s28 }
 0x588   : > { %s1604_s28 = smov %s1329_s29  ;;  %s1605_s29 = smov %s1429_s14 }
 0x589   : > { %s1606_s30 = smov %s1418_s11  ;;  %20 = sbr.rel (!%p18_p3) target bundleno = 3 (0x3), region = 90 }
 0x58e   :  { %1018 = vsyncpa [#allocation4], 1 }
 0x58f   :  { %1020 = vsyncpa [#allocation4 + $0x1], 1 }

</bundles_post_ra>
